<compile_context>
chip_gen: v5e
topology: v5e:2x2
jax: 0.10.0
libtpu: 0.0.40
codegen_flags: <defaults>
</compile_context>

<pallas_src>
import math

import numpy as np
import jax
import jax.numpy as jnp
from jax import lax
from jax.experimental import pallas as pl
from jax.experimental.pallas import tpu as pltpu

# ----------------------------- config (small synthetic sizes) --------------------
SEQ_LEN = 16
PRED_LEN = 16
ENC_IN = 4            # configs.enc_in (channels C)
BATCH = 2

B = BATCH
C = ENC_IN
L = SEQ_LEN
N_OUT = SEQ_LEN + PRED_LEN                       # irfft length (32)
P_L = int((SEQ_LEN + PRED_LEN) / 2 + 1)          # 17
FREQ_LEN = SEQ_LEN // 2 + 1                      # 9
DOM = FREQ_LEN // 4                              # dominance_freq = 2
LENGTH_RATIO = (SEQ_LEN + PRED_LEN) / SEQ_LEN    # 2.0
DOM_UP = int(DOM * LENGTH_RATIO)                 # 4
DOWNSAMPLE_LAYERS = 2
BN_EPS = 1e-5


# ----------------------------- host-side structural matrices ---------------------
def find_closest_factors(n):
    s = int(math.sqrt(n))
    for i in range(s, 0, -1):
        if n % i == 0:
            return i, n // i


def haar_matrix(h, w):
    # (h*w, 4*S): flattened (h, w) image -> [LL | HL | LH | HH] flattened subbands.
    assert h % 2 == 0 and w % 2 == 0  # TODO(synk): odd dims would need DWT zero-pad
    wh = w // 2
    S = (h // 2) * wh
    H = np.zeros((h * w, 4 * S), np.float64)
    for r in range(h):
        for col in range(w):
            n = r * w + col
            s = (r // 2) * wh + (col // 2)
            pr, pc = r % 2, col % 2
            H[n, 0 * S + s] = 0.5                          # LL
            H[n, 1 * S + s] = 0.5 if pc else -0.5          # HL
            H[n, 2 * S + s] = 0.5 if pr else -0.5          # LH
            H[n, 3 * S + s] = 0.5 if pr == pc else -0.5    # HH
    return H


def avgpool_matrix(n):
    P = np.zeros((n, n // 2), np.float64)
    for j in range(n // 2):
        P[2 * j, j] = 0.5
        P[2 * j + 1, j] = 0.5
    return P


_lens = [L // (2 ** i) for i in range(DOWNSAMPLE_LAYERS + 1)]       # [16, 8, 4]
S_LIST = []
_heff_np = []                                                        # [(4, L, S_i)]
_pool = np.eye(L)
for _Ln in _lens:
    _h, _w = find_closest_factors(_Ln)
    _Hm = haar_matrix(_h, _w)
    _S = (_h // 2) * (_w // 2)
    S_LIST.append(_S)
    _Heff = _pool @ _Hm                                              # fold avg_pool1d chain
    _heff_np.append(np.stack([_Heff[:, sb * _S:(sb + 1) * _S] for sb in range(4)]))
    _pool = _pool @ avgpool_matrix(_Ln)
WT_CH = int(sum(S_LIST))                                             # 7

# irfft as a matmul: x[t] = sum_k Re[k]*_Ar[k,t] + Im[k]*_Ai[k,t]
_t = np.arange(N_OUT)
_k = np.arange(P_L)
_wk = np.where((_k == 0) | (_k == N_OUT // 2), 1.0, 2.0)
_ang = 2.0 * np.pi * np.outer(_k, _t) / N_OUT
_Ar = (_wk[:, None] / N_OUT) * np.cos(_ang)                          # (P_L, N_OUT)
_Ai = -(_wk[:, None] / N_OUT) * np.sin(_ang)
_Ai[0, :] = 0.0
_Ai[N_OUT // 2, :] = 0.0          # irfft ignores imag of DC / Nyquist bins

# rfft rows (only the first DOM bins are used)
_n = np.arange(L)
_DCOS = np.stack([np.cos(2 * np.pi * k * _n / L) for k in range(DOM)])
_DSIN = np.stack([-np.sin(2 * np.pi * k * _n / L) for k in range(DOM)])


# ----------------------------- packed constant slab layout -----------------------
def _align8(n):
    return ((n + 7) // 8) * 8


HPAD = _align8(B * WT_CH)        # rows per Haar subband block (14 -> 16)
UPAD = B * 2 * DOM_UP            # rows per pre-broadcast rDFT block (16)

ROW_HCAT = 0                                   # 4*HPAD rows,        B*L cols
ROW_DEXP = ROW_HCAT + 4 * HPAD                 # 2*DOM*UPAD rows,    B*L cols
ROW_WF = _align8(ROW_DEXP + 2 * DOM * UPAD)    # 4 blocks x 8 rows,  C cols
ROW_BCONV = _align8(ROW_WF + 4 * 8)            # 1 row,              C cols
ROW_PQ = _align8(ROW_BCONV + 1)                # 2*DOM*UPAD rows,    C cols
ROW_AUPS = _align8(ROW_PQ + 2 * DOM * UPAD)    # B*PRED_LEN rows,    UPAD cols
ROW_AWT = _align8(ROW_AUPS + B * PRED_LEN)     # B*PRED_LEN rows,    B*WT_CH cols
ROW_CONST = _align8(ROW_AWT + B * PRED_LEN)    # PRED_LEN rows,      C cols
SLAB_ROWS = _align8(ROW_CONST + PRED_LEN)      # 312
SLAB_COLS = 128


# ----------------------------- Pallas kernel --------------------------------------
def forecast_kernel(x_ref, slab_ref, o_ref):
    # ---- per-sample instance normalization over the length axis (VPU/EUP) ----
    x = x_ref[...]                                                   # (B, L, C)
    mean = jnp.mean(x, axis=1, keepdims=True)                        # (B, 1, C)
    xc = x - mean
    # torch.var(..., dim=1) default is the unbiased estimator (sum / (L-1))
    var = jnp.sum(xc * xc, axis=1, keepdims=True) * (1.0 / (L - 1)) + 1e-5
    rstd = lax.rsqrt(var)
    sv = var * rstd                                                  # sqrt(var + 1e-5)
    xn = (xc * rstd).reshape(B * L, C)                               # (B*L, C)

    # ---- one fused MXU dot: [avg-pool+Haar (all scales/subbands) ; rDFT rows] ----
    combo = slab_ref[ROW_HCAT:ROW_DEXP + 2 * DOM * UPAD, 0:B * L]    # (128, 32)
    proj = jnp.dot(combo, xn, preferred_element_type=jnp.float32)    # (128, C)

    # ---- folded 1x1 conv + eval BN channel mix (4 accumulating K=C dots) + ReLU ----
    wf_all = slab_ref[ROW_WF:ROW_WF + 4 * 8, 0:C]                    # (32, C)
    conv = None
    for sb in range(4):
        haar_sb = proj[sb * HPAD:sb * HPAD + B * WT_CH]              # (B*WT_CH, C)
        wfT = wf_all[sb * 8:sb * 8 + C]                              # (C, C)
        part = jnp.dot(haar_sb, wfT, preferred_element_type=jnp.float32)
        conv = part if conv is None else conv + part
    bconv = slab_ref[ROW_BCONV:ROW_BCONV + 1, 0:C]                   # (1, C)
    wt_x = jnp.maximum(conv + bconv, 0.0)                            # (B*WT_CH, C)

    # ---- per-channel complex frequency upsampler: pure VPU on pre-broadcast rows ----
    stack = proj[4 * HPAD:]                                          # (2*DOM*UPAD, C)
    pq_all = slab_ref[ROW_PQ:ROW_PQ + 2 * DOM * UPAD, 0:C]           # (64, C)
    ups = None
    for k in range(DOM):
        re_blk = stack[(2 * k) * UPAD:(2 * k + 1) * UPAD]            # Re of bin k, (16, C)
        im_blk = stack[(2 * k + 1) * UPAD:(2 * k + 2) * UPAD]        # Im of bin k
        p_blk = pq_all[(2 * k) * UPAD:(2 * k + 1) * UPAD]
        q_blk = pq_all[(2 * k + 1) * UPAD:(2 * k + 2) * UPAD]
        term = re_blk * p_blk + im_blk * q_blk
        ups = term if ups is None else ups + term                    # (UPAD, C)

    # ---- fused [upsampled spectrum ; WTLinear spectrum] x irfft(last PRED_LEN) ----
    a_ups = slab_ref[ROW_AUPS:ROW_AUPS + B * PRED_LEN, 0:UPAD]       # (B*PRED, UPAD)
    a_wt = slab_ref[ROW_AWT:ROW_AWT + B * PRED_LEN, 0:B * WT_CH]     # (B*PRED, B*WT_CH)
    out_core = (jnp.dot(a_ups, ups, preferred_element_type=jnp.float32)
                + jnp.dot(a_wt, wt_x, preferred_element_type=jnp.float32))

    # ---- add folded post-ReLU biases, de-normalize, single bulk store ----
    const = slab_ref[ROW_CONST:ROW_CONST + PRED_LEN, 0:C]            # (PRED, C)
    out3 = out_core.reshape(B, PRED_LEN, C)
    o_ref[...] = (out3 + const[None]) * sv + mean


def mfc_forecast(x_enc, slab):
    return pl.pallas_call(
        forecast_kernel,
        out_shape=jax.ShapeDtypeStruct((B, PRED_LEN, C), jnp.float32),
        in_specs=[pl.BlockSpec(memory_space=pltpu.MemorySpace.VMEM),
                  pl.BlockSpec(memory_space=pltpu.MemorySpace.VMEM)],
        out_specs=pl.BlockSpec(memory_space=pltpu.MemorySpace.VMEM),
    )(x_enc, slab)


mfc_forecast = jax.jit(mfc_forecast)


# ----------------------------- parameters -----------------------------------------
def build_raw_params(key):
    ks = jax.random.split(key, 8)
    # Down_wt 1x1 conv (4C -> C) with eval-mode BatchNorm2d folded in
    w_conv = 0.1 * jax.random.normal(ks[0], (C, 4 * C), jnp.float32)
    b_conv = 0.1 * jax.random.normal(ks[1], (C,), jnp.float32)
    gamma, beta = jnp.ones((C,)), jnp.zeros((C,))
    rmean, rvar = jnp.zeros((C,)), jnp.ones((C,))
    scale = gamma / jnp.sqrt(rvar + BN_EPS)
    wf = w_conv * scale[:, None]                                  # (C, 4C)
    bf = (b_conv - rmean) * scale + beta                          # (C,)
    # per-channel complex freq upsampler (nn.Linear(DOM, DOM_UP) in cfloat)
    wr = 0.1 * jax.random.normal(ks[2], (C, DOM_UP, DOM), jnp.float32)
    wi = 0.1 * jax.random.normal(ks[3], (C, DOM_UP, DOM), jnp.float32)
    br = 0.1 * jax.random.normal(ks[4], (C, DOM_UP), jnp.float32)
    bi = 0.1 * jax.random.normal(ks[5], (C, DOM_UP), jnp.float32)
    # WTLinear(WT_CH -> P_L)
    w_wt = 0.1 * jax.random.normal(ks[6], (P_L, WT_CH), jnp.float32)
    b_wt = 0.1 * jax.random.normal(ks[7], (P_L,), jnp.float32)
    return dict(wf=wf, bf=bf, wr=wr, wi=wi, br=br, bi=bi, w_wt=w_wt, b_wt=b_wt)


def build_slab(raw):
    wf = np.asarray(raw["wf"], np.float64)
    bf = np.asarray(raw["bf"], np.float64)
    wr = np.asarray(raw["wr"], np.float64)
    wi = np.asarray(raw["wi"], np.float64)
    br = np.asarray(raw["br"], np.float64)
    bi = np.asarray(raw["bi"], np.float64)
    w_wt = np.asarray(raw["w_wt"], np.float64)
    b_wt = np.asarray(raw["b_wt"], np.float64)

    slab = np.zeros((SLAB_ROWS, SLAB_COLS), np.float64)

    # fused avg-pool + Haar (all scales) per subband, block-diagonal over batch
    h_cat = [np.concatenate([_heff_np[i][sb] for i in range(DOWNSAMPLE_LAYERS + 1)],
                            axis=1) for sb in range(4)]              # each (L, WT_CH)
    for sb in range(4):
        for b in range(B):
            r0 = ROW_HCAT + sb * HPAD + b * WT_CH
            slab[r0:r0 + WT_CH, b * L:(b + 1) * L] = h_cat[sb].T

    # low-frequency rDFT rows, pre-broadcast over the upsampler output rows,
    # block-diagonal over batch (cos block then sin block per frequency bin)
    for k in range(DOM):
        for b in range(B):
            rre = ROW_DEXP + (2 * k) * UPAD + b * 2 * DOM_UP
            rim = ROW_DEXP + (2 * k + 1) * UPAD + b * 2 * DOM_UP
            slab[rre:rre + 2 * DOM_UP, b * L:(b + 1) * L] = _DCOS[k][None, :]
            slab[rim:rim + 2 * DOM_UP, b * L:(b + 1) * L] = _DSIN[k][None, :]

    # folded 1x1 conv + BN weights, transposed per subband (8-row aligned blocks)
    for sb in range(4):
        slab[ROW_WF + sb * 8:ROW_WF + sb * 8 + C, 0:C] = wf[:, sb * C:(sb + 1) * C].T
    slab[ROW_BCONV, 0:C] = bf

    # complex upsampler weight planes, tiled over batch:  ups = sum_k Re_k*P_k + Im_k*Q_k
    for k in range(DOM):
        p_half = np.concatenate([wr[:, :, k].T, wi[:, :, k].T], axis=0)   # (2*DOM_UP, C)
        q_half = np.concatenate([-wi[:, :, k].T, wr[:, :, k].T], axis=0)
        slab[ROW_PQ + (2 * k) * UPAD:ROW_PQ + (2 * k + 1) * UPAD, 0:C] = np.tile(p_half, (B, 1))
        slab[ROW_PQ + (2 * k + 1) * UPAD:ROW_PQ + (2 * k + 2) * UPAD, 0:C] = np.tile(q_half, (B, 1))

    # irfft restricted to the last PRED_LEN steps (x length_ratio), block-diag over batch
    off = N_OUT - PRED_LEN
    ar_low = _Ar[:DOM_UP, off:]                                      # (DOM_UP, PRED)
    ai_low = _Ai[:DOM_UP, off:]
    aup_blk = LENGTH_RATIO * np.concatenate([ar_low.T, ai_low.T], axis=1)  # (PRED, 2*DOM_UP)
    awt_blk = LENGTH_RATIO * (_Ar[:, off:].T @ w_wt)                 # (PRED, WT_CH)
    for b in range(B):
        slab[ROW_AUPS + b * PRED_LEN:ROW_AUPS + (b + 1) * PRED_LEN,
             b * 2 * DOM_UP:(b + 1) * 2 * DOM_UP] = aup_blk
        slab[ROW_AWT + b * PRED_LEN:ROW_AWT + (b + 1) * PRED_LEN,
             b * WT_CH:(b + 1) * WT_CH] = awt_blk

    # post-ReLU biases (upsampler br/bi and WTLinear b_wt) folded through irfft x LR
    bias_cl = br @ ar_low + bi @ ai_low                              # (C, PRED)
    bias_wt = b_wt @ _Ar[:, off:]                                    # (PRED,)
    slab[ROW_CONST:ROW_CONST + PRED_LEN, 0:C] = LENGTH_RATIO * (bias_cl.T + bias_wt[:, None])

    return jnp.asarray(slab.astype(np.float32))


# ----------------------------- float64 NumPy reference (un-fused math) ------------
def reference_forecast(x_enc, raw):
    x = np.asarray(x_enc, np.float64)
    wf = np.asarray(raw["wf"], np.float64)
    bf = np.asarray(raw["bf"], np.float64)
    wr = np.asarray(raw["wr"], np.float64)
    wi = np.asarray(raw["wi"], np.float64)
    br = np.asarray(raw["br"], np.float64)
    bi = np.asarray(raw["bi"], np.float64)
    w_wt = np.asarray(raw["w_wt"], np.float64)
    b_wt = np.asarray(raw["b_wt"], np.float64)

    out = np.zeros((B, PRED_LEN, C), np.float64)
    for b in range(B):
        xb = x[b]                                                    # (L, C)
        mean = xb.mean(axis=0, keepdims=True)
        xc = xb - mean
        var = (xc * xc).sum(axis=0, keepdims=True) / (L - 1) + 1e-5  # unbiased (torch.var)
        sv = np.sqrt(var)
        xn = xc / sv                                                 # (L, C)

        # multi-scale avg-pool -> Haar DWT -> 1x1 conv(+BN) -> ReLU
        feats = []
        for i in range(DOWNSAMPLE_LAYERS + 1):
            acc = np.zeros((S_LIST[i], C), np.float64)
            for sb in range(4):
                haar_sb = _heff_np[i][sb].T @ xn                     # (S_i, C)
                acc = acc + haar_sb @ wf[:, sb * C:(sb + 1) * C].T
            feats.append(np.maximum(acc + bf[None, :], 0.0))
        x_wt = np.concatenate(feats, axis=0)                         # (WT_CH, C)
        wt_spec = w_wt @ x_wt + b_wt[:, None]                        # (P_L, C)

        # low-frequency rfft + per-channel complex upsampler
        spec = np.fft.rfft(xn, axis=0)[:DOM]                         # (DOM, C)
        full = np.zeros((P_L, C), np.complex128)
        for c in range(C):
            Wc = wr[c] + 1j * wi[c]                                  # (DOM_UP, DOM)
            full[:DOM_UP, c] = Wc @ spec[:, c] + (br[c] + 1j * bi[c])
        full = full + wt_spec                                        # real wt spectrum
        low_xy = np.fft.irfft(full, n=N_OUT, axis=0)                 # (N_OUT, C)
        xy = low_xy * LENGTH_RATIO * sv + mean
        out[b] = xy[-PRED_LEN:]
    return out


# ----------------------------- demo -------------------------------------------------
if __name__ == "__main__":
    root = jax.random.PRNGKey(0)
    k_par, k_x = jax.random.split(root)
    raw = build_raw_params(k_par)
    slab = build_slab(raw)
    x_enc = jax.random.normal(k_x, (BATCH, SEQ_LEN, ENC_IN), jnp.float32)

    out = jax.block_until_ready(mfc_forecast(x_enc, slab))
    ref = reference_forecast(np.asarray(x_enc), raw)

    assert out.shape == (BATCH, PRED_LEN, ENC_IN), out.shape
    assert bool(jnp.all(jnp.isfinite(out)))
    # Kernel uses default (single-pass) MXU precision; compare against the float64
    # reference with a tolerance sized for bf16-pass f32 matmuls.
    np.testing.assert_allclose(np.asarray(out), ref, rtol=2e-2, atol=2e-2)
    print("KERNEL_OK")
</pallas_src>

<mosaic_0001>
module attributes {stable_mosaic.version = 11 : i64} {
  func.func @forecast_kernel(%arg0: memref<2x16x4xf32, #tpu.memory_space<vmem>>, %arg1: memref<312x128xf32, #tpu.memory_space<vmem>>, %arg2: memref<2x16x4xf32, #tpu.memory_space<vmem>>) attributes {dimension_semantics = [], scalar_prefetch = 0 : i64, scratch_operands = 0 : i64, tpu.core_type = #tpu.core_type<tc>} {
    %c0 = arith.constant 0 : index
    %c0_0 = arith.constant 0 : index
    %c0_1 = arith.constant 0 : index
    %0 = vector.load %arg0[%c0, %c0_0, %c0_1] : memref<2x16x4xf32, #tpu.memory_space<vmem>>, vector<2x16x4xf32>
    %cst = arith.constant dense<0.000000e+00> : vector<2x4xf32>
    %1 = vector.multi_reduction <add>, %0, %cst [1] : vector<2x16x4xf32> to vector<2x4xf32>
    %2 = vector.shape_cast %1 : vector<2x4xf32> to vector<2x1x4xf32>
    %cst_2 = arith.constant 1.600000e+01 : f32
    %3 = vector.broadcast %cst_2 : f32 to vector<2x1x4xf32>
    %4 = arith.divf %2, %3 : vector<2x1x4xf32>
    %5 = vector.broadcast %4 : vector<2x1x4xf32> to vector<2x16x4xf32>
    %6 = arith.subf %0, %5 : vector<2x16x4xf32>
    %7 = arith.mulf %6, %6 : vector<2x16x4xf32>
    %cst_3 = arith.constant dense<0.000000e+00> : vector<2x4xf32>
    %8 = vector.multi_reduction <add>, %7, %cst_3 [1] : vector<2x16x4xf32> to vector<2x4xf32>
    %9 = vector.shape_cast %8 : vector<2x4xf32> to vector<2x1x4xf32>
    %cst_4 = arith.constant 0.0666666701 : f32
    %10 = vector.broadcast %cst_4 : f32 to vector<2x1x4xf32>
    %11 = arith.mulf %9, %10 : vector<2x1x4xf32>
    %cst_5 = arith.constant 9.99999974E-6 : f32
    %12 = vector.broadcast %cst_5 : f32 to vector<2x1x4xf32>
    %13 = arith.addf %11, %12 : vector<2x1x4xf32>
    %14 = math.rsqrt %13 : vector<2x1x4xf32>
    %15 = arith.mulf %13, %14 : vector<2x1x4xf32>
    %16 = vector.broadcast %14 : vector<2x1x4xf32> to vector<2x16x4xf32>
    %17 = arith.mulf %6, %16 : vector<2x16x4xf32>
    %18 = vector.shape_cast %17 : vector<2x16x4xf32> to vector<32x4xf32>
    %c0_6 = arith.constant 0 : index
    %c0_7 = arith.constant 0 : index
    %19 = vector.load %arg1[%c0_6, %c0_7] : memref<312x128xf32, #tpu.memory_space<vmem>>, vector<128x32xf32>
    %cst_8 = arith.constant dense<0.000000e+00> : vector<128x4xf32>
    %20 = tpu.matmul %19, %18, %cst_8 {dimension_numbers = #tpu.dot_dimension_numbers<[1], [0], [0], [1], [0, 0, 1, 1], [], []>} : vector<128x32xf32>, vector<32x4xf32>, vector<128x4xf32> -> vector<128x4xf32>
    %c128 = arith.constant 128 : index
    %c0_9 = arith.constant 0 : index
    %21 = vector.load %arg1[%c128, %c0_9] : memref<312x128xf32, #tpu.memory_space<vmem>>, vector<32x4xf32>
    %22 = vector.extract_strided_slice %20 {offsets = [0, 0], sizes = [14, 4], strides = [1, 1]} : vector<128x4xf32> to vector<14x4xf32>
    %23 = vector.extract_strided_slice %21 {offsets = [0, 0], sizes = [4, 4], strides = [1, 1]} : vector<32x4xf32> to vector<4x4xf32>
    %cst_10 = arith.constant dense<0.000000e+00> : vector<14x4xf32>
    %24 = tpu.matmul %22, %23, %cst_10 {dimension_numbers = #tpu.dot_dimension_numbers<[1], [0], [0], [1], [0, 0, 1, 1], [], []>} : vector<14x4xf32>, vector<4x4xf32>, vector<14x4xf32> -> vector<14x4xf32>
    %25 = vector.extract_strided_slice %20 {offsets = [16, 0], sizes = [14, 4], strides = [1, 1]} : vector<128x4xf32> to vector<14x4xf32>
    %26 = vector.extract_strided_slice %21 {offsets = [8, 0], sizes = [4, 4], strides = [1, 1]} : vector<32x4xf32> to vector<4x4xf32>
    %cst_11 = arith.constant dense<0.000000e+00> : vector<14x4xf32>
    %27 = tpu.matmul %25, %26, %cst_11 {dimension_numbers = #tpu.dot_dimension_numbers<[1], [0], [0], [1], [0, 0, 1, 1], [], []>} : vector<14x4xf32>, vector<4x4xf32>, vector<14x4xf32> -> vector<14x4xf32>
    %28 = arith.addf %24, %27 : vector<14x4xf32>
    %29 = vector.extract_strided_slice %20 {offsets = [32, 0], sizes = [14, 4], strides = [1, 1]} : vector<128x4xf32> to vector<14x4xf32>
    %30 = vector.extract_strided_slice %21 {offsets = [16, 0], sizes = [4, 4], strides = [1, 1]} : vector<32x4xf32> to vector<4x4xf32>
    %cst_12 = arith.constant dense<0.000000e+00> : vector<14x4xf32>
    %31 = tpu.matmul %29, %30, %cst_12 {dimension_numbers = #tpu.dot_dimension_numbers<[1], [0], [0], [1], [0, 0, 1, 1], [], []>} : vector<14x4xf32>, vector<4x4xf32>, vector<14x4xf32> -> vector<14x4xf32>
    %32 = arith.addf %28, %31 : vector<14x4xf32>
    %33 = vector.extract_strided_slice %20 {offsets = [48, 0], sizes = [14, 4], strides = [1, 1]} : vector<128x4xf32> to vector<14x4xf32>
    %34 = vector.extract_strided_slice %21 {offsets = [24, 0], sizes = [4, 4], strides = [1, 1]} : vector<32x4xf32> to vector<4x4xf32>
    %cst_13 = arith.constant dense<0.000000e+00> : vector<14x4xf32>
    %35 = tpu.matmul %33, %34, %cst_13 {dimension_numbers = #tpu.dot_dimension_numbers<[1], [0], [0], [1], [0, 0, 1, 1], [], []>} : vector<14x4xf32>, vector<4x4xf32>, vector<14x4xf32> -> vector<14x4xf32>
    %36 = arith.addf %32, %35 : vector<14x4xf32>
    %c160 = arith.constant 160 : index
    %c0_14 = arith.constant 0 : index
    %37 = vector.load %arg1[%c160, %c0_14] : memref<312x128xf32, #tpu.memory_space<vmem>>, vector<1x4xf32>
    %38 = vector.broadcast %37 : vector<1x4xf32> to vector<14x4xf32>
    %39 = arith.addf %36, %38 : vector<14x4xf32>
    %cst_15 = arith.constant 0.000000e+00 : f32
    %40 = vector.broadcast %cst_15 : f32 to vector<14x4xf32>
    %41 = arith.maximumf %39, %40 : vector<14x4xf32>
    %42 = vector.extract_strided_slice %20 {offsets = [64, 0], sizes = [64, 4], strides = [1, 1]} : vector<128x4xf32> to vector<64x4xf32>
    %c168 = arith.constant 168 : index
    %c0_16 = arith.constant 0 : index
    %43 = vector.load %arg1[%c168, %c0_16] : memref<312x128xf32, #tpu.memory_space<vmem>>, vector<64x4xf32>
    %44 = vector.extract_strided_slice %42 {offsets = [0, 0], sizes = [16, 4], strides = [1, 1]} : vector<64x4xf32> to vector<16x4xf32>
    %45 = vector.extract_strided_slice %42 {offsets = [16, 0], sizes = [16, 4], strides = [1, 1]} : vector<64x4xf32> to vector<16x4xf32>
    %46 = vector.extract_strided_slice %43 {offsets = [0, 0], sizes = [16, 4], strides = [1, 1]} : vector<64x4xf32> to vector<16x4xf32>
    %47 = vector.extract_strided_slice %43 {offsets = [16, 0], sizes = [16, 4], strides = [1, 1]} : vector<64x4xf32> to vector<16x4xf32>
    %48 = arith.mulf %44, %46 : vector<16x4xf32>
    %49 = arith.mulf %45, %47 : vector<16x4xf32>
    %50 = arith.addf %48, %49 : vector<16x4xf32>
    %51 = vector.extract_strided_slice %42 {offsets = [32, 0], sizes = [16, 4], strides = [1, 1]} : vector<64x4xf32> to vector<16x4xf32>
    %52 = vector.extract_strided_slice %42 {offsets = [48, 0], sizes = [16, 4], strides = [1, 1]} : vector<64x4xf32> to vector<16x4xf32>
    %53 = vector.extract_strided_slice %43 {offsets = [32, 0], sizes = [16, 4], strides = [1, 1]} : vector<64x4xf32> to vector<16x4xf32>
    %54 = vector.extract_strided_slice %43 {offsets = [48, 0], sizes = [16, 4], strides = [1, 1]} : vector<64x4xf32> to vector<16x4xf32>
    %55 = arith.mulf %51, %53 : vector<16x4xf32>
    %56 = arith.mulf %52, %54 : vector<16x4xf32>
    %57 = arith.addf %55, %56 : vector<16x4xf32>
    %58 = arith.addf %50, %57 : vector<16x4xf32>
    %c232 = arith.constant 232 : index
    %c0_17 = arith.constant 0 : index
    %59 = vector.load %arg1[%c232, %c0_17] : memref<312x128xf32, #tpu.memory_space<vmem>>, vector<32x16xf32>
    %c264 = arith.constant 264 : index
    %c0_18 = arith.constant 0 : index
    %60 = vector.load %arg1[%c264, %c0_18] : memref<312x128xf32, #tpu.memory_space<vmem>>, vector<32x14xf32>
    %cst_19 = arith.constant dense<0.000000e+00> : vector<32x4xf32>
    %61 = tpu.matmul %59, %58, %cst_19 {dimension_numbers = #tpu.dot_dimension_numbers<[1], [0], [0], [1], [0, 0, 1, 1], [], []>} : vector<32x16xf32>, vector<16x4xf32>, vector<32x4xf32> -> vector<32x4xf32>
    %cst_20 = arith.constant dense<0.000000e+00> : vector<32x4xf32>
    %62 = tpu.matmul %60, %41, %cst_20 {dimension_numbers = #tpu.dot_dimension_numbers<[1], [0], [0], [1], [0, 0, 1, 1], [], []>} : vector<32x14xf32>, vector<14x4xf32>, vector<32x4xf32> -> vector<32x4xf32>
    %63 = arith.addf %61, %62 : vector<32x4xf32>
    %c296 = arith.constant 296 : index
    %c0_21 = arith.constant 0 : index
    %64 = vector.load %arg1[%c296, %c0_21] : memref<312x128xf32, #tpu.memory_space<vmem>>, vector<16x4xf32>
    %65 = vector.shape_cast %63 : vector<32x4xf32> to vector<2x16x4xf32>
    %66 = vector.shape_cast %64 : vector<16x4xf32> to vector<1x16x4xf32>
    %67 = vector.broadcast %66 : vector<1x16x4xf32> to vector<2x16x4xf32>
    %68 = arith.addf %65, %67 : vector<2x16x4xf32>
    %69 = vector.broadcast %15 : vector<2x1x4xf32> to vector<2x16x4xf32>
    %70 = arith.mulf %68, %69 : vector<2x16x4xf32>
    %71 = vector.broadcast %4 : vector<2x1x4xf32> to vector<2x16x4xf32>
    %72 = arith.addf %70, %71 : vector<2x16x4xf32>
    %c0_22 = arith.constant 0 : index
    %c0_23 = arith.constant 0 : index
    %c0_24 = arith.constant 0 : index
    %73 = vector.load %arg2[%c0_22, %c0_23, %c0_24] : memref<2x16x4xf32, #tpu.memory_space<vmem>>, vector<2x16x4xf32>
    tpu.vector_store %arg2[%c0_22, %c0_23, %c0_24], %72 {strides = array<i32>} : memref<2x16x4xf32, #tpu.memory_space<vmem>>, vector<2x16x4xf32>,
    return
  }
}

</mosaic_0001>

<bundles_post_ra>
// kernel: mfc_forecast.1
= control target key start
LH: loop header
LB: loop body
LE: loop exit
PB: predicated region body
PF: predicated region fallthrough
CT: control target
= control target key end

     0   :  { %7 = vsyncpa [#allocation3], 0  ;;  %s615_s12 = smov [#allocation2]   ;;  %s616_s14 = smov 128   ;;  %s735_s0 = inlined_call_operand.vmem [shape: f32[2,16,4], index: 0, kind: input, shape index: {}]   ;;  %s736_s1 = inlined_call_operand.hbm [shape: f32[312,128], index: 1, kind: input, shape index: {}]   ;;  %s737_s2 = inlined_call_operand.vmem [shape: f32[2,16,4], index: 2, kind: output, shape index: {}]  }
   0x1   :  { %s14_s11 = sshll.u32 %s736_s1, 4  ;;  %s16_s13 = sshll.u32 %s615_s12, 4  ;;  %s15_s11 = int_to_ptr.hbm [resolvable:$true] %s14_s11  ;;  %s17_s13 = int_to_ptr.vmem [resolvable:$true] %s16_s13 }
   0x2   :  { %s617_s15 = smov 8  }
   0x3   :  { %22 = dma.hbm_to_vmem [thread:$0]  %s15_s11, 4992, %s17_s13, [#allocation3], %s616_s14, %s616_s14, %s617_s15  }
   0x4   :  { %613 = dma.done.wait [#allocation3], 4992  }
   0x5   :  { %614 = vsyncadd [#allocation3], 4294962304  ;;  %v618_v0 = vmov 16.0   ;;  %vm31_vm0 = vcmask 31744   ;;  %v29_v2 = vld [vmem:[%s735_s0 + $0x10] sm:$0xff]  ;;  %v30_v3 = vld [vmem:[%s735_s0 + $0x18] sm:$0xff] }
   0x6   :  { %583 = vrcp.f32 %v618_v0  ;;  %v27_v4 = vld [vmem:[%s735_s0] sm:$0xff]  ;;  %v41_v5 = vsel %vm31_vm0, %v29_v2, 0.0  ;;  %v42_v6 = vsel %vm31_vm0, %v30_v3, 0.0  ;;  %v28_v8 = vld [vmem:[%s735_s0 + $0x8] sm:$0xff]  ;;  %vm131_vm8 = vcmask 261120  }
   0x7   :  { %v43_v9 = vadd.f32 %v42_v6, %v41_v5  ;;  %v32_v10 = vsel %vm31_vm0, %v27_v4, 0.0  ;;  %v33_v11 = vsel %vm31_vm0, %v28_v8, 0.0  ;;  %vm255_vm9 = vcmask 1043456  }
   0x8   :  { %v34_v13 = vadd.f32 %v33_v11, %v32_v10  ;;  %vm464_vm10 = vcmask 130048   ;;  %vm431_vm11 = vcmask 1045504   ;;  %vm418_vm12 = vcmask 113664  }
   0x9   :  { %v44_v14 = vrot.slane %v43_v9, 4 }
   0xa   :  { %v35_v16 = vrot.slane %v34_v13, 4 }
   0xb   :  { %v45_v17 = vadd.f32 %v44_v14, %v43_v9 }
   0xc   :  { %v584_v1 = vpop.eup %583  ;;  %v36_v18 = vadd.f32 %v35_v16, %v34_v13  ;;  %v116_v16 = vld [vmem:[#allocation2 + $0x8] sm:$0xff] }
   0xd   :  { %v51_v7 = vmul.f32 16.0, %v584_v1  ;;  %v46_v19 = vrot.slane %v45_v17, 2  ;;  %vm55_vm1 = vweird.f32 %v584_v1 }
   0xe   :  { %v37_v21 = vrot.slane %v36_v18, 2 }
   0xf   :  { %v52_v12 = vsub.f32 1.0, %v51_v7  ;;  %v47_v22 = vadd.f32 %v46_v19, %v45_v17  ;;  %v117_v17 = vld [vmem:[#allocation2 + $0x10] sm:$0xff]  ;;  %v123_v19 = vld [vmem:[#allocation2 + $0x40] sm:$0xff] }
  0x10   :  { %v38_v23 = vadd.f32 %v37_v21, %v36_v18  ;;  %v118_v18 = vld [vmem:[#allocation2 + $0x18] sm:$0xff]  ;;  %v129_v21 = vld [vmem:[#allocation2 + $0x70] sm:$0xff] }
  0x11   :  { %v53_v15 = vmul.f32 %v584_v1, %v52_v12  ;;  %v48_v24 = vrot.slane %v47_v22, 1 }
  0x12   :  { %v39_v26 = vrot.slane %v38_v23, 1 }
  0x13   :  { %v54_v20 = vadd.f32 %v584_v1, %v53_v15  ;;  %v49_v27 = vadd.f32 %v48_v24, %v47_v22  ;;  %v115_v15 = vld [vmem:[#allocation2] sm:$0xff]  ;;  %v128_v24 = vld [vmem:[#allocation2 + $0x68] sm:$0xff] }
  0x14   :  { %v40_v28 = vadd.f32 %v39_v26, %v38_v23  ;;  %v119_v22 = vld [vmem:[#allocation2 + $0x20] sm:$0xff]  ;;  %v124_v23 = vld [vmem:[#allocation2 + $0x48] sm:$0xff] }
  0x15   :  { %v56_v25 = vsel %vm55_vm1, %v584_v1, %v54_v20  ;;  %v127_v20 = vld [vmem:[#allocation2 + $0x60] sm:$0xff]  ;;  %v120_v26 = vld [vmem:[#allocation2 + $0x28] sm:$0xff] }
  0x16   :  { %v653_v29 = vmul.f32 %v56_v25, %v49_v27  ;;  %v655_v30 = vmul.f32 %v56_v25, %v40_v28  ;;  %v130_v25 = vld [vmem:[#allocation2 + $0x78] sm:$0xff]  ;;  %v125_v27 = vld [vmem:[#allocation2 + $0x50] sm:$0xff] }
  0x17   :  { %v121_v28 = vld [vmem:[#allocation2 + $0x30] sm:$0xff] }
  0x18   :  { %v61_v31 = vsub.f32 %v29_v2, %v653_v29  ;;  %v62_v32 = vsub.f32 %v30_v3, %v653_v29  ;;  %v59_v33 = vsub.f32 %v27_v4, %v655_v30  ;;  %v60_v34 = vsub.f32 %v28_v8, %v655_v30 }
  0x1a   :  { %v65_v35 = vmul.f32 %v61_v31, %v61_v31  ;;  %v66_v36 = vmul.f32 %v62_v32, %v62_v32  ;;  %v63_v37 = vmul.f32 %v59_v33, %v59_v33  ;;  %v64_v38 = vmul.f32 %v60_v34, %v60_v34 }
  0x1c   :  { %v76_v39 = vsel %vm31_vm0, %v65_v35, 0.0  ;;  %v77_v40 = vsel %vm31_vm0, %v66_v36, 0.0  ;;  %v67_v42 = vsel %vm31_vm0, %v63_v37, 0.0  ;;  %v68_v43 = vsel %vm31_vm0, %v64_v38, 0.0  ;;  %v247_v35 = vld [vmem:[#allocation2 + $0x90] sm:$0xff]  ;;  %v248_v38 = vld [vmem:[#allocation2 + $0x98] sm:$0xff] }
  0x1d   :  { %v78_v41 = vadd.f32 %v77_v40, %v76_v39  ;;  %v69_v44 = vadd.f32 %v68_v43, %v67_v42 }
  0x1f   :  { %v79_v45 = vrot.slane %v78_v41, 4  ;;  %v70_v46 = vrot.slane %v69_v44, 4 }
  0x21   :  { %v80_v47 = vadd.f32 %v79_v45, %v78_v41  ;;  %v71_v48 = vadd.f32 %v70_v46, %v69_v44 }
  0x23   :  { %v81_v49 = vrot.slane %v80_v47, 2  ;;  %v72_v50 = vrot.slane %v71_v48, 2 }
  0x25   :  { %v82_v51 = vadd.f32 %v81_v49, %v80_v47  ;;  %v73_v52 = vadd.f32 %v72_v50, %v71_v48  ;;  %v393_v49 = vld [vmem:[#allocation2 + $0xd0] sm:$0xff] }
  0x27   :  { %v83_v53 = vrot.slane %v82_v51, 1  ;;  %v74_v54 = vrot.slane %v73_v52, 1 }
  0x29   :  { %v84_v55 = vadd.f32 %v83_v53, %v82_v51  ;;  %v75_v56 = vadd.f32 %v74_v54, %v73_v52  ;;  %v395_v51 = vld [vmem:[#allocation2 + $0xe0] sm:$0xff]  ;;  %v389_v52 = vld [vmem:[#allocation2 + $0xb0] sm:$0xff] }
  0x2b   :  { %v86_v57 = vmul.f32 0.06666667, %v84_v55  ;;  %v85_v58 = vmul.f32 0.06666667, %v75_v56  ;;  %v391_v55 = vld [vmem:[#allocation2 + $0xc0] sm:$0xff] }
  0x2d   :  { %v665_v59 = vadd.f32 1e-05, %v86_v57  ;;  %v667_v60 = vadd.f32 1e-05, %v85_v58 }
  0x2f   :  { %585 = vrsqrt.f32 %v665_v59  ;;  %vm105_vm2 = vweird.f32 %v665_v59  ;;  %vm95_vm4 = vweird.f32 %v667_v60 }
  0x30   :  { %587 = vrsqrt.f32 %v667_v60 }
  0x35   :  { %v586_v61 = vpop.eup %585 }
  0x36   :  { %v588_v62 = vpop.eup %587  ;;  %v100_v63 = vmul.f32 %v586_v61, %v665_v59  ;;  %vm106_vm3 = vweird.f32 %v586_v61 }
  0x37   :  { %v90_v0 = vmul.f32 %v588_v62, %v667_v60  ;;  %vm96_vm5 = vweird.f32 %v588_v62  ;;  %vm107_vm6 = vmor %vm105_vm2, %vm106_vm3 }
  0x38   :  { %v101_v1 = vmul.f32 %v586_v61, %v100_v63  ;;  %vm97_vm7 = vmor %vm95_vm4, %vm96_vm5 }
  0x39   :  { %v91_v2 = vmul.f32 %v588_v62, %v90_v0 }
  0x3a   :  { %v102_v3 = vmul.f32 0.5, %v101_v1 }
  0x3b   :  { %v92_v4 = vmul.f32 0.5, %v91_v2  ;;  %v388_v2 = vld [vmem:[#allocation2 + $0xa8] sm:$0xff] }
  0x3c   :  { %v103_v5 = vsub.f32 1.5, %v102_v3  ;;  %v390_v3 = vld [vmem:[#allocation2 + $0xb8] sm:$0xff] }
  0x3d   :  { %v93_v6 = vsub.f32 1.5, %v92_v4  ;;  %v392_v4 = vld [vmem:[#allocation2 + $0xc8] sm:$0xff] }
  0x3e   :  { %v104_v7 = vmul.f32 %v586_v61, %v103_v5  ;;  %v394_v5 = vld [vmem:[#allocation2 + $0xd8] sm:$0xff] }
  0x3f   :  { %v94_v8 = vmul.f32 %v588_v62, %v93_v6 }
  0x40   :  { %v675_v9 = vsel %vm107_vm6, %v586_v61, %v104_v7 }
  0x41   :  { %v114_v10 = vmul.f32 %v675_v9, %v62_v32  ;;  %v113_v11 = vmul.f32 %v675_v9, %v61_v31  ;;  %v679_v12 = vsel %vm97_vm7, %v588_v62, %v94_v8  ;;  %v126_v31 = vld [vmem:[#allocation2 + $0x58] sm:$0xff] }
  0x42   :  { %v112_v13 = vmul.f32 %v679_v12, %v60_v34  ;;  %v111_v14 = vmul.f32 %v679_v12, %v59_v33  ;;  %v122_v32 = vld [vmem:[#allocation2 + $0x38] sm:$0xff]  ;;  %v245_v33 = vld [vmem:[#allocation2 + $0x80] sm:$0xff]  ;;  %v246_v34 = vld [vmem:[#allocation2 + $0x88] sm:$0xff] }
  0x43   :  { %192 = vmatpush.msra.mxu0 %v114_v10  ;;  %566 = vmatpush.msra.mxu1 %v114_v10 }
  0x44   :  { %567 = vmatpush.msra.mxu2 %v114_v10  ;;  %568 = vmatpush.msra.mxu3 %v114_v10 }
  0x45   :  { %193 = vmatpush.msra.mxu0 %v113_v11  ;;  %569 = vmatpush.msra.mxu1 %v113_v11 }
  0x46   :  { %570 = vmatpush.msra.mxu2 %v113_v11  ;;  %571 = vmatpush.msra.mxu3 %v113_v11 }
  0x47   :  { %194 = vmatpush.msra.mxu0 %v112_v13  ;;  %572 = vmatpush.msra.mxu1 %v112_v13 }
  0x48   :  { %573 = vmatpush.msra.mxu2 %v112_v13  ;;  %574 = vmatpush.msra.mxu3 %v112_v13 }
  0x49   :  { %195 = vmatpush.msra.mxu0 %v111_v14  ;;  %575 = vmatpush.msra.mxu1 %v111_v14 }
  0x4a   :  { %529 = vmatmul.msk.f32.vlgmr.msra.gmra.mxu0 %vm131_vm8, %v115_v15  ;;  %576 = vmatpush.msra.mxu2 %v111_v14 }
  0x4b   :  { %577 = vmatpush.msra.mxu3 %v111_v14  ;;  %537 = vmatmul.msk.f32.vlgmr.msra.gmra.mxu1 %vm131_vm8, %v123_v19 }
  0x4c   :  { %541 = vmatmul.msk.f32.vlgmr.msra.gmra.mxu2 %vm131_vm8, %v127_v20  ;;  %543 = vmatmul.msk.f32.vlgmr.msra.gmra.mxu3 %vm131_vm8, %v129_v21 }
  0x4d   :  { %548 = vmatpush.msk.msrb.mxu2 %vm255_vm9, %v245_v33  ;;  %545 = vmatpush.msk.msrb.mxu1 %vm255_vm9, %v246_v34 }
  0x4e   :  { %551 = vmatpush.msk.msrb.mxu3 %vm255_vm9, %v247_v35  ;;  %v413_v35 = vld [vmem:[#allocation2 + $0x100] sm:$0xff] }
  0x4f   :  { %554 = vmatpush.msk.msra.mxu1 %vm255_vm9, %v248_v38 }
  0x52   :  { %530 = vmatmul.msk.f32.gmra.mxu0 %vm131_vm8, %v116_v16  ;;  %v410_v16 = vld [vmem:[#allocation2 + $0xe8] sm:$0xff] }
  0x53   :  { %538 = vmatmul.msk.f32.gmra.mxu1 %vm131_vm8, %v124_v23 }
  0x54   :  { %542 = vmatmul.msk.f32.gmra.mxu2 %vm131_vm8, %v128_v24  ;;  %544 = vmatmul.msk.f32.gmra.mxu3 %vm131_vm8, %v130_v25 }
  0x5a   :  { %531 = vmatmul.msk.f32.gmra.mxu0 %vm131_vm8, %v117_v17 }
  0x5b   :  { %539 = vmatmul.msk.f32.gmra.mxu1 %vm131_vm8, %v125_v27 }
  0x62   :  { %532 = vmatmul.msk.f32.gmra.mxu0 %vm131_vm8, %v118_v18  ;;  %v411_v18 = vld [vmem:[#allocation2 + $0xf0] sm:$0xff] }
  0x63   :  { %540 = vmatmul.msk.f32.gmra.mxu1 %vm131_vm8, %v126_v31 }
  0x6a   :  { %533 = vmatmul.msk.f32.gmra.mxu0 %vm131_vm8, %v119_v22  ;;  %v412_v22 = vld [vmem:[#allocation2 + $0xf8] sm:$0xff] }
  0x72   :  { %534 = vmatmul.msk.f32.gmra.mxu0 %vm131_vm8, %v120_v26 }
  0x7a   :  { %535 = vmatmul.msk.f32.gmra.mxu0 %vm131_vm8, %v121_v28 }
  0x82   :  { %536 = vmatmul.msk.f32.gmra.mxu0 %vm131_vm8, %v122_v32  ;;  %v582_v32 = vld [vmem:[#allocation2 + $0xa0] ss:$0 sm:$0xff] }
  0xc7   :  { %v197_v36 = vpop.f32.mrf.mxu0 }
  0xc8   :  { %549 = vmatmul.msk.f32.vlgmr.msrb.gmra.mxu2 %vm31_vm0, %v197_v36  ;;  %v221_v41 = vpop.f32.mrf.mxu1 }
  0xc9   :  { %v396_v6 = vmul.f32 %v388_v2, %v221_v41  ;;  %v415_v41 = vld [vmem:[#allocation2 + $0x110] sm:$0xff] }
  0xcf   :  { %v200_v37 = vpop.f32.mrf.mxu0  ;;  %v233_v43 = vpop.f32.mrf.mxu2 }
  0xd0   :  { %550 = vmatmul.msk.f32.gmra.mxu2 %vm31_vm0, %v200_v37  ;;  %v224_v44 = vpop.f32.mrf.mxu1  ;;  %v239_v45 = vpop.f32.mrf.mxu3  ;;  %v402_v8 = vmul.f32 %v392_v4, %v233_v43  ;;  %v417_v43 = vld [vmem:[#allocation2 + $0x120] sm:$0xff] }
  0xd1   :  { %v397_v57 = vmul.f32 %v389_v52, %v224_v44  ;;  %v404_v10 = vmul.f32 %v394_v5, %v239_v45 }
  0xd3   :  { %v406_v13 = vadd.f32 %v404_v10, %v402_v8 }
  0xd7   :  { %v203_v39 = vpop.f32.mrf.mxu0  ;;  %v236_v48 = vpop.f32.mrf.mxu2 }
  0xd8   :  { %546 = vmatmul.msk.f32.vlgmr.msrb.gmra.mxu1 %vm31_vm0, %v203_v39  ;;  %v227_v47 = vpop.f32.mrf.mxu1  ;;  %v242_v50 = vpop.f32.mrf.mxu3  ;;  %v403_v53 = vmul.f32 %v393_v49, %v236_v48 }
  0xd9   :  { %v405_v54 = vmul.f32 %v395_v51, %v242_v50  ;;  %v398_v7 = vmul.f32 %v390_v3, %v227_v47  ;;  %v109_v47 = vmul.f32 %v679_v12, %v667_v60  ;;  %v110_v12 = vmul.f32 %v675_v9, %v665_v59 }
  0xdb   :  { %v407_v62 = vadd.f32 %v405_v54, %v403_v53  ;;  %v400_v11 = vadd.f32 %v398_v7, %v396_v6  ;;  %v507_v54 = vld [vmem:[#allocation2 + $0x130] sm:$0xff] }
  0xdd   :  { %v408_v14 = vadd.f32 %v406_v13, %v400_v11 }
  0xdf   :  { %v206_v40 = vpop.f32.mrf.mxu0 }
  0xe0   :  { %547 = vmatmul.msk.f32.gmra.mxu1 %vm31_vm0, %v206_v40  ;;  %v230_v58 = vpop.f32.mrf.mxu1  ;;  %v414_v40 = vld [vmem:[#allocation2 + $0x108] sm:$0xff] }
  0xe1   :  { %v399_v61 = vmul.f32 %v391_v55, %v230_v58 }
  0xe3   :  { %v401_v63 = vadd.f32 %v399_v61, %v397_v57 }
  0xe5   :  { %v409_v0 = vadd.f32 %v407_v62, %v401_v63 }
  0xe7   :  { %v209_v42 = vpop.f32.mrf.mxu0  ;;  %491 = vmatpush.msra.mxu3 %v409_v0 }
  0xe8   :  { %552 = vmatmul.msk.f32.vlgmr.msrb.gmra.mxu3 %vm31_vm0, %v209_v42  ;;  %v416_v42 = vld [vmem:[#allocation2 + $0x118] sm:$0xff] }
  0xe9   :  { %492 = vmatpush.msra.mxu3 %v408_v14 }
  0xef   :  { %v212_v46 = vpop.f32.mrf.mxu0 }
  0xf0   :  { %553 = vmatmul.msk.f32.gmra.mxu3 %vm31_vm0, %v212_v46  ;;  %v506_v46 = vld [vmem:[#allocation2 + $0x128] sm:$0xff] }
  0xf7   :  { %v215_v56 = vpop.f32.mrf.mxu0 }
  0xf8   :  { %555 = vmatmul.msk.f32.vlgmr.msra.gmra.mxu1 %vm31_vm0, %v215_v56  ;;  %562 = vmatmul.msk.f32.vlgmr.msra.gmra.mxu3 %vm464_vm10, %v410_v16 }
  0xff   :  { %v218_v1 = vpop.f32.mrf.mxu0 }
 0x100   :  { %556 = vmatmul.msk.f32.gmra.mxu1 %vm31_vm0, %v218_v1  ;;  %563 = vmatmul.msk.f32.gmra.mxu3 %vm464_vm10, %v411_v18 }
 0x108   :  { %564 = vmatmul.msk.f32.gmra.mxu3 %vm464_vm10, %v412_v22 }
 0x110   :  { %565 = vmatmul.msk.f32.gmra.mxu3 %vm464_vm10, %v413_v35 }
 0x14b   :  { %v308_v19 = vpop.f32.mrf.mxu2 }
 0x153   :  { %v311_v24 = vpop.f32.mrf.mxu2 }
 0x155   :  { %v276_v15 = vpop.f32.mrf.mxu1 }
 0x156   :  { %v309_v23 = vadd.f32 %v308_v19, %v276_v15 }
 0x15d   :  { %v279_v17 = vpop.f32.mrf.mxu1 }
 0x15e   :  { %v312_v26 = vadd.f32 %v311_v24, %v279_v17 }
 0x16b   :  { %v340_v20 = vpop.f32.mrf.mxu3 }
 0x16c   :  { %v346_v27 = vadd.f32 %v340_v20, %v309_v23 }
 0x173   :  { %v343_v25 = vpop.f32.mrf.mxu3 }
 0x174   :  { %v347_v28 = vadd.f32 %v343_v25, %v312_v26 }
 0x175   :  { %v374_v21 = vpop.f32.mrf.mxu1 }
 0x176   :  { %v380_v31 = vadd.f32 %v374_v21, %v346_v27 }
 0x178   :  { %v384_v36 = vadd.f32 %v582_v32, %v380_v31 }
 0x17a   :  { %v386_v39 = vmax.f32 %v384_v36, 0.0 }
 0x17b   :  { %v494_v44 = vpop.f32.mrf.mxu3 }
 0x17d   :  { %v377_v33 = vpop.f32.mrf.mxu1 }
 0x17e   :  { %v381_v34 = vadd.f32 %v377_v33, %v347_v28 }
 0x180   :  { %v385_v37 = vadd.f32 %v582_v32, %v381_v34 }
 0x182   :  { %v387_v38 = vmax.f32 %v385_v37, 0.0 }
 0x183   :  { %v497_v49 = vpop.f32.mrf.mxu3 }
 0x184   :  { %557 = vmatpush.msk.msra.mxu2 %vm431_vm11, %v387_v38 }
 0x186   :  { %450 = vmatpush.msra.mxu2 %v386_v39 }
 0x187   :  { %558 = vmatmul.msk.f32.vlgmr.msra.gmra.mxu2 %vm418_vm12, %v414_v40 }
 0x18b   :  { %v500_v57 = vpop.f32.mrf.mxu3 }
 0x18f   :  { %559 = vmatmul.msk.f32.gmra.mxu2 %vm418_vm12, %v415_v41 }
 0x193   :  { %v503_v1 = vpop.f32.mrf.mxu3 }
 0x197   :  { %560 = vmatmul.msk.f32.gmra.mxu2 %vm418_vm12, %v416_v42 }
 0x19f   :  { %561 = vmatmul.msk.f32.gmra.mxu2 %vm418_vm12, %v417_v43 }
 0x20a   :  { %v452_v45 = vpop.f32.mrf.mxu2 }
 0x20b   :  { %v495_v48 = vadd.f32 %v494_v44, %v452_v45 }
 0x20d   :  { %v508_v50 = vadd.f32 %v506_v46, %v495_v48 }
 0x20f   :  { %v512_v51 = vmul.f32 %v508_v50, %v109_v47 }
 0x211   :  { %v516_v52 = vadd.f32 %v512_v51, %v655_v30 }
 0x212   :  { %v455_v53 = vpop.f32.mrf.mxu2 }
 0x213   :  { %520 = vst.msk [vmem:[%s737_s2] sm:$0xff] %vm31_vm0, %v516_v52  ;;  %v498_v55 = vadd.f32 %v497_v49, %v455_v53 }
 0x215   :  { %v509_v56 = vadd.f32 %v507_v54, %v498_v55 }
 0x217   :  { %v513_v58 = vmul.f32 %v509_v56, %v109_v47 }
 0x219   :  { %v517_v61 = vadd.f32 %v513_v58, %v655_v30 }
 0x21a   :  { %v458_v60 = vpop.f32.mrf.mxu2 }
 0x21b   :  { %521 = vst.msk [vmem:[%s737_s2 + $0x8] sm:$0xff] %vm31_vm0, %v517_v61  ;;  %v501_v62 = vadd.f32 %v500_v57, %v458_v60 }
 0x21d   :  { %v510_v63 = vadd.f32 %v506_v46, %v501_v62 }
 0x21f   :  { %v514_v0 = vmul.f32 %v510_v63, %v110_v12 }
 0x221   :  { %v518_v2 = vadd.f32 %v514_v0, %v653_v29 }
 0x222   :  { %v461_v3 = vpop.f32.mrf.mxu2 }
 0x223   :  { %522 = vst.msk [vmem:[%s737_s2 + $0x10] sm:$0xff] %vm31_vm0, %v518_v2  ;;  %v504_v30 = vadd.f32 %v503_v1, %v461_v3 }
 0x225   :  { %v511_v4 = vadd.f32 %v507_v54, %v504_v30 }
 0x227   :  { %v515_v5 = vmul.f32 %v511_v4, %v110_v12 }
 0x229   :  { %v519_v6 = vadd.f32 %v515_v5, %v653_v29 }
 0x22b   :  { %523 = vst.msk [vmem:[%s737_s2 + $0x18] sm:$0xff] %vm31_vm0, %v519_v6 }
 0x22c   :  { %528 = vsyncpa [#allocation3], 1 }

</bundles_post_ra>
